<compile_context>
chip_gen: v7x
topology: tpu7x:2x2x1
jax: 0.10.0
libtpu: 0.0.40
codegen_flags: <defaults>
</compile_context>

<pallas_src>
import functools

import jax
import jax.numpy as jnp
from jax.experimental import pallas as pl
from jax.experimental.pallas import tpu as pltpu

_EPS = 1e-6  # torch.nn.functional.pairwise_distance default eps


# ---------------------------------------------------------------------------
# Kernels
# ---------------------------------------------------------------------------
def _kernel_sumsq(y1_ref, y2_ref, out_ref, acc_ref, *, valid_rows, tile_r, divisor):
    """d == 0 branch: accumulate sum((y1 - y2 + eps)^2); emit per-core partial / divisor."""
    c = pl.program_id(0)
    j = pl.program_id(1)
    nbpc = pl.num_programs(1)

    @pl.when(j == 0)
    def _():
        acc_ref[...] = jnp.zeros_like(acc_ref)

    diff = y1_ref[...].astype(jnp.float32) - y2_ref[...].astype(jnp.float32) + _EPS
    row_sums = jnp.sum(diff * diff, axis=-1, keepdims=True)   # (tile_r, 1): XLU lane reduce

    gb = c * nbpc + j                                         # unclamped global block index
    fully_valid = (gb + 1) * tile_r <= valid_rows

    @pl.when(fully_valid)
    def _():                                                  # hot path: no mask work at all
        acc_ref[...] += row_sums

    @pl.when(jnp.logical_not(fully_valid))
    def _():                                                  # tail / padded blocks only
        r = gb * tile_r + jax.lax.broadcasted_iota(jnp.int32, (tile_r, 1), 0)
        # Mask the *value* after compute so garbage in padded rows cannot leak.
        acc_ref[...] += jnp.where(r < valid_rows, row_sums, 0.0)

    @pl.when(j == nbpc - 1)
    def _():
        out_ref[0, 0] = jnp.sum(acc_ref[...]) / divisor       # one sublane reduce total


def _kernel_margin(y1_ref, y2_ref, out_ref, acc_ref, *, batch, tile_b, m):
    """d != 0 branch: accumulate clamp(m - ||y1 - y2 + eps||, 0)^2 per row; emit partial / batch."""
    c = pl.program_id(0)
    j = pl.program_id(1)
    nbpc = pl.num_programs(1)

    @pl.when(j == 0)
    def _():
        acc_ref[...] = jnp.zeros_like(acc_ref)

    diff = y1_ref[...].astype(jnp.float32) - y2_ref[...].astype(jnp.float32) + _EPS
    sq_dist = jnp.sum(diff * diff, axis=-1, keepdims=True)    # (tile_b, 1)
    delta = jnp.maximum(m - jnp.sqrt(sq_dist), 0.0)           # sqrt on EUP (free slot)
    val = delta * delta                                       # (tile_b, 1)

    gb = c * nbpc + j
    fully_valid = (gb + 1) * tile_b <= batch

    @pl.when(fully_valid)
    def _():
        acc_ref[...] += val                                   # (TB,1) row-partial accumulator

    @pl.when(jnp.logical_not(fully_valid))
    def _():
        r = gb * tile_b + jax.lax.broadcasted_iota(jnp.int32, (tile_b, 1), 0)
        acc_ref[...] += jnp.where(r < batch, val, 0.0)

    @pl.when(j == nbpc - 1)
    def _():
        out_ref[0, 0] = jnp.sum(acc_ref[...]) / batch


# ---------------------------------------------------------------------------
# Wrapper
# ---------------------------------------------------------------------------
def _choose_tile_rows(rows, row_bytes, target_bytes=2 * 1024 * 1024):
    """~2 MiB per input buffer; multiple of 8 sublanes; never larger than the array."""
    if rows <= 8:
        return int(rows)                                      # block equals full dim
    tr = max(8, (target_bytes // max(1, row_bytes)) // 8 * 8)
    return int(min(tr, (rows // 8) * 8))


def _sanitize_tile(tile, rows):
    if rows <= 8:
        return int(rows)
    tile = max(8, (int(tile) // 8) * 8)
    return int(min(tile, (rows // 8) * 8))


def contrastive_loss(y1, y2, d: int = 0, m: float = 2.0,
                     tile_rows: int | None = None, num_cores: int = 2):
    """Pallas TPU implementation of ContrastiveLoss.forward.

    Pass bf16/fp16 inputs natively — the kernel upcasts to f32 in-register; a
    wrapper-side astype(float32) would double HBM bytes on this bandwidth-bound op.
    """
    assert y1.shape == y2.shape and y1.ndim == 2
    B, D = y1.shape
    itemsize = jnp.dtype(y1.dtype).itemsize

    if int(d) == 0 and (B * D) % 128 == 0:
        # Lane-dense flat view: d==0 only needs a global sum of squared diffs, so present
        # full 128-lane rows (free row-major reshape) even when D is small / non-128.
        rows, width = (B * D) // 128, 128
        a, b_ = y1.reshape(rows, width), y2.reshape(rows, width)
        make_kernel = lambda t: functools.partial(
            _kernel_sumsq, valid_rows=rows, tile_r=t, divisor=float(B))
        transcendentals = 0
    elif int(d) == 0:
        rows, width = B, D
        a, b_ = y1, y2
        make_kernel = lambda t: functools.partial(
            _kernel_sumsq, valid_rows=rows, tile_r=t, divisor=float(B))
        transcendentals = 0
    else:
        rows, width = B, D                                    # d != 0 needs per-row structure
        a, b_ = y1, y2
        make_kernel = lambda t: functools.partial(
            _kernel_margin, batch=B, tile_b=t, m=float(m))
        transcendentals = B                                   # one sqrt per row

    if tile_rows is not None:
        tile = _sanitize_tile(tile_rows, rows)
    else:
        tile = _choose_tile_rows(rows, width * itemsize)

    nb = int(pl.cdiv(rows, tile))                             # number of real row-blocks
    nc = int(num_cores) if nb >= int(num_cores) else 1        # core split only if there is work
    nbpc = int(pl.cdiv(nb, nc))                               # blocks per core

    def in_map(c, j):
        # Padded steps (c*nbpc + j >= nb) are clamped onto the last real block; the kernel
        # zeroes their contribution using the *unclamped* global block index.
        return (jnp.minimum(c * nbpc + j, nb - 1), 0)

    out = pl.pallas_call(
        make_kernel(tile),
        out_shape=jax.ShapeDtypeStruct((nc, 1), jnp.float32),
        grid_spec=pltpu.PrefetchScalarGridSpec(
            num_scalar_prefetch=0,
            grid=(nc, nbpc),
            in_specs=[
                pl.BlockSpec((tile, width), in_map),
                pl.BlockSpec((tile, width), in_map),
            ],
            out_specs=pl.BlockSpec((1, 1), lambda c, j: (c, 0),
                                   memory_space=pltpu.SMEM),
            scratch_shapes=[pltpu.VMEM((tile, 1), jnp.float32)],
        ),
        compiler_params=pltpu.CompilerParams(
            dimension_semantics=("parallel", "arbitrary"),    # v7x: both TCs stream HBM
        ),
        cost_estimate=pl.CostEstimate(
            flops=3 * B * D,
            transcendentals=transcendentals,
            bytes_accessed=2 * B * D * itemsize,
        ),
    )(a, b_)
    return jnp.sum(out)                                       # sum per-core partials (already / B)


# ---------------------------------------------------------------------------
# Plain-JAX reference (torch semantics)
# ---------------------------------------------------------------------------
def _reference(y1, y2, d=0, m=2.0):
    diff = y1.astype(jnp.float32) - y2.astype(jnp.float32) + _EPS
    dist = jnp.sqrt(jnp.sum(diff * diff, axis=-1))
    if d == 0:
        return jnp.mean(dist ** 2)
    delta = jnp.maximum(m - dist, 0.0)
    return jnp.mean(delta ** 2)


if __name__ == "__main__":
    key = jax.random.PRNGKey(0)
    k1, k2, k3, k4, k5, k6 = jax.random.split(key, 6)

    # Small shapes consistent with a (batch, hidden) embedding pair.
    B, D = 8, 32
    y1 = jax.random.normal(k1, (B, D), dtype=jnp.float32)
    y2 = jax.random.normal(k2, (B, D), dtype=jnp.float32)

    # d == 0 branch (lane-dense flat path, B*D % 128 == 0)
    out0 = contrastive_loss(y1, y2, d=0)
    jax.block_until_ready(out0)
    assert jnp.allclose(out0, _reference(y1, y2, d=0), rtol=1e-5, atol=1e-5)

    # d != 0 branch (margin m = 2.0)
    out1 = contrastive_loss(y1, y2, d=1, m=2.0)
    jax.block_until_ready(out1)
    assert jnp.allclose(out1, _reference(y1, y2, d=1, m=2.0), rtol=1e-5, atol=1e-5)

    # Multi-block + 2-core split + tail masking, d != 0 (B not multiple of tile).
    B2, D2 = 20, 32
    z1 = jax.random.normal(k3, (B2, D2), dtype=jnp.float32)
    z2 = jax.random.normal(k4, (B2, D2), dtype=jnp.float32)
    out2 = contrastive_loss(z1, z2, d=0)
    out3 = contrastive_loss(z1, z2, d=1, m=2.0, tile_rows=8)
    jax.block_until_ready((out2, out3))
    assert jnp.allclose(out2, _reference(z1, z2, d=0), rtol=1e-5, atol=1e-5)
    assert jnp.allclose(out3, _reference(z1, z2, d=1, m=2.0), rtol=1e-5, atol=1e-5)

    # d == 0 flat path exercising both cores + padded-step masking, and a non-128-multiple
    # fallback path, with native bf16 inputs (upcast happens in-register).
    B3, D3 = 40, 32                      # 40*32/128 = 10 rows -> tile 8 -> 2 blocks, 2 cores
    w1 = jax.random.normal(k5, (B3, D3), dtype=jnp.bfloat16)
    w2 = jax.random.normal(k6, (B3, D3), dtype=jnp.bfloat16)
    out4 = contrastive_loss(w1, w2, d=0, tile_rows=8)
    out5 = contrastive_loss(w1[:, :24], w2[:, :24], d=0)      # B*D=960, not % 128 -> (B, D) path
    jax.block_until_ready((out4, out5))
    assert jnp.allclose(out4, _reference(w1, w2, d=0), rtol=2e-2, atol=2e-2)
    assert jnp.allclose(out5, _reference(w1[:, :24], w2[:, :24], d=0), rtol=2e-2, atol=2e-2)

    print("KERNEL_OK")
</pallas_src>

<mosaic_0001>
module attributes {stable_mosaic.version = 11 : i64} {
  func.func @_kernel_sumsq(%arg0: i32, %arg1: i32, %arg2: memref<2x128xf32, #tpu.memory_space<vmem>>, %arg3: memref<2x128xf32, #tpu.memory_space<vmem>>, %arg4: memref<1x1xf32, #tpu.memory_space<smem>>, %arg5: memref<2x1xf32, #tpu.memory_space<vmem>>) attributes {dimension_semantics = [#tpu.dimension_semantics<parallel>, #tpu.dimension_semantics<arbitrary>], iteration_bounds = array<i64: 1, 1>, scalar_prefetch = 0 : i64, scratch_operands = 1 : i64, tpu.core_type = #tpu.core_type<tc>, window_params = [{transform_indices = @transform_0, window_bounds = array<i64: 2, 128>}, {transform_indices = @transform_1, window_bounds = array<i64: 2, 128>}, {transform_indices = @transform_2, window_bounds = array<i64: 1, 1>}]} {
    %c0_i32 = arith.constant 0 : i32
    %0 = arith.cmpi eq, %arg1, %c0_i32 : i32
    %1 = arith.extui %0 : i1 to i32
    %c0_i32_0 = arith.constant 0 : i32
    %2 = arith.cmpi ne, %1, %c0_i32_0 : i32
    scf.if %2 {
      %cst_11 = arith.constant 0.000000e+00 : f32
      %24 = vector.broadcast %cst_11 : f32 to vector<2x1xf32>
      %c0_12 = arith.constant 0 : index
      %c0_13 = arith.constant 0 : index
      %25 = vector.load %arg5[%c0_12, %c0_13] : memref<2x1xf32, #tpu.memory_space<vmem>>, vector<2x1xf32>
      tpu.vector_store %arg5[%c0_12, %c0_13], %24 {strides = array<i32>} : memref<2x1xf32, #tpu.memory_space<vmem>>, vector<2x1xf32>,
    } else {
    }
    %c0 = arith.constant 0 : index
    %c0_1 = arith.constant 0 : index
    %3 = vector.load %arg2[%c0, %c0_1] : memref<2x128xf32, #tpu.memory_space<vmem>>, vector<2x128xf32>
    %c0_2 = arith.constant 0 : index
    %c0_3 = arith.constant 0 : index
    %4 = vector.load %arg3[%c0_2, %c0_3] : memref<2x128xf32, #tpu.memory_space<vmem>>, vector<2x128xf32>
    %5 = arith.subf %3, %4 : vector<2x128xf32>
    %cst = arith.constant 9.99999997E-7 : f32
    %6 = vector.broadcast %cst : f32 to vector<2x128xf32>
    %7 = arith.addf %5, %6 : vector<2x128xf32>
    %8 = arith.mulf %7, %7 : vector<2x128xf32>
    %cst_4 = arith.constant dense<0.000000e+00> : vector<2xf32>
    %9 = vector.multi_reduction <add>, %8, %cst_4 [1] : vector<2x128xf32> to vector<2xf32>
    %10 = vector.shape_cast %9 : vector<2xf32> to vector<2x1xf32>
    %c1_i32 = arith.constant 1 : i32
    %11 = arith.muli %arg0, %c1_i32 : i32
    %12 = arith.addi %11, %arg1 : i32
    %c1_i32_5 = arith.constant 1 : i32
    %13 = arith.addi %12, %c1_i32_5 : i32
    %c2_i32 = arith.constant 2 : i32
    %14 = arith.muli %13, %c2_i32 : i32
    %c2_i32_6 = arith.constant 2 : i32
    %15 = arith.cmpi sle, %14, %c2_i32_6 : i32
    %16 = arith.extui %15 : i1 to i32
    %c0_i32_7 = arith.constant 0 : i32
    %17 = arith.cmpi ne, %16, %c0_i32_7 : i32
    scf.if %17 {
      %c0_11 = arith.constant 0 : index
      %c0_12 = arith.constant 0 : index
      %24 = vector.load %arg5[%c0_11, %c0_12] : memref<2x1xf32, #tpu.memory_space<vmem>>, vector<2x1xf32>
      %25 = arith.addf %24, %10 : vector<2x1xf32>
      %c0_13 = arith.constant 0 : index
      %c0_14 = arith.constant 0 : index
      %26 = vector.load %arg5[%c0_13, %c0_14] : memref<2x1xf32, #tpu.memory_space<vmem>>, vector<2x1xf32>
      tpu.vector_store %arg5[%c0_13, %c0_14], %25 {strides = array<i32>} : memref<2x1xf32, #tpu.memory_space<vmem>>, vector<2x1xf32>,
    } else {
    }
    %true = arith.constant true
    %18 = arith.xori %15, %true : i1
    %19 = arith.extui %18 : i1 to i32
    %c0_i32_8 = arith.constant 0 : i32
    %20 = arith.cmpi ne, %19, %c0_i32_8 : i32
    scf.if %20 {
      %c2_i32_11 = arith.constant 2 : i32
      %24 = arith.muli %12, %c2_i32_11 : i32
      %25 = tpu.iota {dimensions = array<i32: 0>} : vector<2x1xi32>
      %26 = vector.broadcast %24 : i32 to vector<2x1xi32>
      %27 = arith.addi %26, %25 : vector<2x1xi32>
      %c0_12 = arith.constant 0 : index
      %c0_13 = arith.constant 0 : index
      %28 = vector.load %arg5[%c0_12, %c0_13] : memref<2x1xf32, #tpu.memory_space<vmem>>, vector<2x1xf32>
      %c2_i32_14 = arith.constant 2 : i32
      %29 = vector.broadcast %c2_i32_14 : i32 to vector<2x1xi32>
      %30 = arith.cmpi slt, %27, %29 : vector<2x1xi32>
      %cst_15 = arith.constant 0.000000e+00 : f32
      %31 = vector.broadcast %cst_15 : f32 to vector<2x1xf32>
      %32 = arith.select %30, %10, %31 : vector<2x1xi1>, vector<2x1xf32>
      %33 = arith.addf %28, %32 : vector<2x1xf32>
      %c0_16 = arith.constant 0 : index
      %c0_17 = arith.constant 0 : index
      %34 = vector.load %arg5[%c0_16, %c0_17] : memref<2x1xf32, #tpu.memory_space<vmem>>, vector<2x1xf32>
      tpu.vector_store %arg5[%c0_16, %c0_17], %33 {strides = array<i32>} : memref<2x1xf32, #tpu.memory_space<vmem>>, vector<2x1xf32>,
    } else {
    }
    %c0_i32_9 = arith.constant 0 : i32
    %21 = arith.cmpi eq, %arg1, %c0_i32_9 : i32
    %22 = arith.extui %21 : i1 to i32
    %c0_i32_10 = arith.constant 0 : i32
    %23 = arith.cmpi ne, %22, %c0_i32_10 : i32
    scf.if %23 {
      %c0_11 = arith.constant 0 : index
      %c0_12 = arith.constant 0 : index
      %24 = vector.load %arg5[%c0_11, %c0_12] : memref<2x1xf32, #tpu.memory_space<vmem>>, vector<2x1xf32>
      %25 = vector.shape_cast %24 : vector<2x1xf32> to vector<1x2x1xf32>
      %cst_13 = arith.constant dense<0.000000e+00> : vector<1xf32>
      %26 = vector.multi_reduction <add>, %25, %cst_13 [1, 2] : vector<1x2x1xf32> to vector<1xf32>
      %27 = vector.shape_cast %26 : vector<1xf32> to vector<1x1x1xf32>
      %28 = vector.extract %27[0, 0, 0] : f32 from vector<1x1x1xf32>
      %cst_14 = arith.constant 8.000000e+00 : f32
      %29 = arith.divf %28, %cst_14 : f32
      %c0_15 = arith.constant 0 : index
      %c0_16 = arith.constant 0 : index
      %30 = memref.load %arg4[%c0_15, %c0_16] : memref<1x1xf32, #tpu.memory_space<smem>>
      memref.store %29, %arg4[%c0_15, %c0_16] : memref<1x1xf32, #tpu.memory_space<smem>>
    } else {
    }
    return
  }
  func.func @transform_0(%arg0: i32, %arg1: i32) -> (i32, i32) {
    %c1_i32 = arith.constant 1 : i32
    %0 = arith.muli %arg0, %c1_i32 : i32
    %1 = arith.addi %0, %arg1 : i32
    %c0_i32 = arith.constant 0 : i32
    %2 = arith.minsi %1, %c0_i32 : i32
    %c0_i32_0 = arith.constant 0 : i32
    %c0_i32_1 = arith.constant 0 : i32
    return %2, %c0_i32_0 : i32, i32
  }
  func.func @transform_1(%arg0: i32, %arg1: i32) -> (i32, i32) {
    %c1_i32 = arith.constant 1 : i32
    %0 = arith.muli %arg0, %c1_i32 : i32
    %1 = arith.addi %0, %arg1 : i32
    %c0_i32 = arith.constant 0 : i32
    %2 = arith.minsi %1, %c0_i32 : i32
    %c0_i32_0 = arith.constant 0 : i32
    %c0_i32_1 = arith.constant 0 : i32
    return %2, %c0_i32_0 : i32, i32
  }
  func.func @transform_2(%arg0: i32, %arg1: i32) -> (i32, i32) {
    %c0_i32 = arith.constant 0 : i32
    %c0_i32_0 = arith.constant 0 : i32
    return %arg0, %c0_i32 : i32, i32
  }
}

</mosaic_0001>

<bundles_post_ra>
// kernel: tpu_custom_call.1
= control target key start
LH: loop header
LB: loop body
LE: loop exit
PB: predicated region body
PF: predicated region fallthrough
CT: control target
= control target key end

     0   :  { %7 = vsyncpa [#allocation4], 0  ;;  %s231_s0 = inlined_call_operand.hbm [shape: f32[2,128], index: 0, kind: input, shape index: {}]   ;;  %s232_s1 = inlined_call_operand.vmem [shape: f32[2,128], index: 1, kind: input, shape index: {}]   ;;  %s233_s2 = inlined_call_operand.hbm [shape: f32[1,1], index: 2, kind: output, shape index: {}]  }
   0x1   :  { %8 = vsyncpa [#allocation5], 0  ;;  %s183_s9 = smov [#allocation3]   ;;  %s147_s13 = scalar_lea.hbm %s231_s0, 32 }
   0x2   :  { %s20_s10 = sshll.u32 %s183_s9, 4  ;;  %p148_p0 = scmp.ne.s32.totalorder %s231_s0, %s147_s13  ;;  %s21_s10 = int_to_ptr.vmem [resolvable:$true] %s20_s10 }
   0x3   :  { %p151_p1 = scmp.lt.u32.totalorder %s147_s13, %s231_s0 }
   0x5   :  { %p153_p2 = pnand %p151_p1, %p148_p0 }
   0x7   :  { %156 = shalt.err (!%p153_p2)
}
   0x8   :  { %s157_s18 = scalar_lea.vmem %s21_s10, 32  ;;  %p162_p4 = scmp.lt.s32.totalorder %s21_s10, %s21_s10 }
   0x9   :  { %p158_p3 = scmp.ne.s32.totalorder %s21_s10, %s157_s18  ;;  %p163_p5 = scmp.lt.s32.totalorder %s157_s18, %s157_s18 }
   0xb   :  { %p164_p6 = por %p163_p5, %p162_p4 }
   0xd   :  { %p165_p7 = pnand %p164_p6, %p158_p3 }
   0xf   :  { %168 = shalt.err (!%p165_p7)
}
  0x10   :  { %23 = dma.hbm_to_vmem [thread:$0]  %s231_s0, 32, %s21_s10, [#allocation4]  }
  0x11   :  { %179 = dma.done.wait [#allocation4], 32  }
  0x12   :  { %180 = vsyncadd [#allocation4], 4294967264  ;;  %vm63_vm0 = vcmask 1024   ;;  %v184_v0 = vmov 0.0   ;;  %v65_v1 = vld [vmem:[#allocation3] sm:$0x3] }
  0x13   :  { %64 = vst.msk [vmem:[#allocation2] sm:$0x3] %vm63_vm0, %v184_v0  ;;  %v66_v2 = vld [vmem:[%s232_s1] sm:$0x3]  ;;  %vm70_vm1 = vcmask 1041408   ;;  %s169_s25 = scalar_lea.hbm %s233_s2, 16 }
  0x14   :  { %v67_v3 = vsub.f32 %v65_v1, %v66_v2  ;;  %p170_p8 = scmp.ne.s32.totalorder %s233_s2, %s169_s25  ;;  %p173_p9 = scmp.lt.u32.totalorder %s169_s25, %s233_s2 }
  0x16   :  { %v68_v4 = vadd.f32 1e-06, %v67_v3  ;;  %p175_p10 = pnand %p173_p9, %p170_p8 }
  0x18   :  { %v69_v5 = vmul.f32 %v68_v4, %v68_v4 }
  0x1a   :  { %v71_v6 = vsel %vm70_vm1, %v69_v5, 0.0  ;;  %v81_v7 = vld [vmem:[#allocation2] sm:$0x3] }
  0x1b   :  { %72 = vadd.xlane.f32.xlu0 %v71_v6 }
  0xa8   :  { %v73_v8 = vpop.xlane.xlu0 %72 }
  0xa9   :  { %v82_v9 = vadd.f32 %v81_v7, %v73_v8 }
  0xab   :  { %84 = vst.msk [vmem:[#allocation2] sm:$0x3] %vm63_vm0, %v82_v9 }
  0xb2   :  { %v103_v10 = vld [vmem:[#allocation2] sm:$0x3] }
  0xb3   :  { %v105_v11 = vsel %vm63_vm0, %v103_v10, 0.0 }
  0xb4   :  { %106 = vadd.xlane.f32.xlu0 %v105_v11 }
 0x141   :  { %v107_v12 = vpop.xlane.xlu0 %106 }
 0x142   :  { %v108_v13 = vrot.slane %v107_v12, 4 }
 0x144   :  { %v109_v14 = vadd.f32 %v108_v13, %v107_v12 }
 0x146   :  { %v110_v15 = vrot.slane %v109_v14, 2 }
 0x148   :  { %v111_v16 = vadd.f32 %v110_v15, %v109_v14 }
 0x14a   :  { %v112_v17 = vrot.slane %v111_v16, 1 }
 0x14c   :  { %v113_v18 = vadd.f32 %v112_v17, %v111_v16 }
 0x14e   :  { %142 = vpush %v113_v18 }
 0x17f   :  { %s143_s0 = spop %142 }
 0x180   :  { %s117_s1 = smul.f32 0.125, %s143_s0 }
 0x182   :  { %119 = sst [smem:[#allocation6]] %s117_s1 }
 0x183   :  { %178 = shalt.err (!%p175_p10)
}
 0x184   :  { %s185_s30 = smov [#allocation6]  }
 0x185   :  { %127 = dma.smem_to_hbm %s185_s30, 16, %s233_s2, [#allocation5]  }
 0x186   :  { %181 = dma.done.wait [#allocation5], 16  }
 0x187   :  { %182 = vsyncadd [#allocation5], 4294967280 }
 0x188   :  { %131 = sfence }
 0x189   :  { %132 = vsyncpa [#allocation4], 1 }
 0x18a   :  { %133 = vsyncpa [#allocation5], 1 }

</bundles_post_ra>
